<compile_context>
chip_gen: v6e
topology: v6e:2x2x1
jax: 0.10.0
libtpu: 0.0.40
codegen_flags: <defaults>
</compile_context>

<pallas_src>
import functools
import math

import jax
import jax.numpy as jnp
from jax.experimental import pallas as pl
from jax.experimental.pallas import tpu as pltpu

LANE = 128
TILE_ROWS_L1 = 2048      # (2048,128) f32 = 1 MiB per input per buffer
TILE_ROWS_PAIR = 512     # keeps the (B, tr, 128) pairwise intermediate small
VMEM_LIMIT = 32 * 1024 * 1024

VGG_LEVEL_WEIGHTS = (1.0 / 32, 1.0 / 16, 1.0 / 8, 1.0 / 4, 1.0)


# ---------------------------------------------------------------------------
# Kernels
# ---------------------------------------------------------------------------
def _l1_partial_kernel(a_ref, b_ref, o_ref, *, n_valid):
    """Per-block partial sums (lanes kept) of |a - b|; tail masked on last block only."""
    i = pl.program_id(0)
    last = pl.num_programs(0) - 1
    tr, ln = a_ref.shape

    def emit(masked):
        v = jnp.abs(a_ref[...].astype(jnp.float32) - b_ref[...].astype(jnp.float32))
        if masked:
            row = jax.lax.broadcasted_iota(jnp.int32, (tr, ln), 0)
            lane = jax.lax.broadcasted_iota(jnp.int32, (tr, ln), 1)
            idx = (i * tr + row) * ln + lane
            v = jnp.where(idx < n_valid, v, 0.0)
        o_ref[...] = v.sum(axis=0, keepdims=True).reshape(1, 1, ln)

    @pl.when(i < last)
    def _():
        emit(False)

    @pl.when(i == last)
    def _():
        emit(True)


def _pairwise_l1_partial_kernel(neg_ref, stu_ref, o_ref, *, rows_valid):
    """Per-chunk partial sums (lanes kept) of sum_{n,b} |neg[n] - stu[b]|."""
    i = pl.program_id(0)
    last = pl.num_programs(0) - 1
    nn, tr, ln = neg_ref.shape

    def emit(masked):
        stu = stu_ref[...].astype(jnp.float32)          # (B, tr, ln)
        neg = neg_ref[...].astype(jnp.float32)          # (NN, tr, ln)
        if masked:
            row = jax.lax.broadcasted_iota(jnp.int32, (tr, ln), 0)
            valid = (i * tr + row) < rows_valid
            stu = jnp.where(valid[None], stu, 0.0)
            neg = jnp.where(valid[None], neg, 0.0)
        acc = None
        for n in range(nn):                              # small static unroll
            d = jnp.abs(stu - neg[n][None]).sum(axis=0)  # (tr, ln), VPU-only adds
            acc = d if acc is None else acc + d
        o_ref[...] = acc.sum(axis=0, keepdims=True).reshape(1, 1, ln)

    @pl.when(i < last)
    def _():
        emit(False)

    @pl.when(i == last)
    def _():
        emit(True)


# ---------------------------------------------------------------------------
# Pallas wrappers
# ---------------------------------------------------------------------------
def _lane_view(x):
    """Flatten to a lane-dense (rows, 128) view. Free bitcast when size % 128 == 0;
    otherwise only the sub-lane remainder (< 128 elements) is zero-padded."""
    flat = x.reshape(-1)
    n = flat.shape[0]
    rows = pl.cdiv(n, LANE)
    if n % LANE:
        flat = jnp.pad(flat, (0, rows * LANE - n))
    return flat.reshape(rows, LANE), n


def _abs_diff_sum(a, b, *, tile_rows=TILE_ROWS_L1):
    """sum(|a - b|) over all elements."""
    a2, n = _lane_view(a)
    b2, _ = _lane_view(b)
    rows = a2.shape[0]
    tr = rows if rows <= tile_rows else tile_rows
    grid = (pl.cdiv(rows, tr),)
    partials = pl.pallas_call(
        functools.partial(_l1_partial_kernel, n_valid=n),
        out_shape=jax.ShapeDtypeStruct((grid[0], 1, LANE), jnp.float32),
        grid_spec=pltpu.PrefetchScalarGridSpec(
            num_scalar_prefetch=0,
            grid=grid,
            in_specs=[pl.BlockSpec((tr, LANE), lambda i: (i, 0)),
                      pl.BlockSpec((tr, LANE), lambda i: (i, 0))],
            out_specs=pl.BlockSpec((1, 1, LANE), lambda i: (i, 0, 0)),
        ),
        compiler_params=pltpu.CompilerParams(
            dimension_semantics=("parallel",),
            vmem_limit_bytes=VMEM_LIMIT),
    )(a2, b2)
    return jnp.sum(partials)


def _pairwise_abs_sum(neg, stu, *, tile_rows=TILE_ROWS_PAIR):
    """sum over all (n, b) pairs of sum_d |neg[n, d] - stu[b, d]| (d = C*H*W)."""
    nn = neg.shape[0]
    b = stu.shape[0]
    d = math.prod(stu.shape[1:])
    negf = neg.reshape(nn, d)
    stuf = stu.reshape(b, d)
    dr = pl.cdiv(d, LANE)
    if d % LANE:
        pad = dr * LANE - d
        negf = jnp.pad(negf, ((0, 0), (0, pad)))
        stuf = jnp.pad(stuf, ((0, 0), (0, pad)))
    neg3 = negf.reshape(nn, dr, LANE)
    stu3 = stuf.reshape(b, dr, LANE)
    tr = dr if dr <= tile_rows else tile_rows
    grid = (pl.cdiv(dr, tr),)
    partials = pl.pallas_call(
        functools.partial(_pairwise_l1_partial_kernel, rows_valid=dr),
        out_shape=jax.ShapeDtypeStruct((grid[0], 1, LANE), jnp.float32),
        grid_spec=pltpu.PrefetchScalarGridSpec(
            num_scalar_prefetch=0,
            grid=grid,
            in_specs=[pl.BlockSpec((nn, tr, LANE), lambda i: (0, i, 0)),
                      pl.BlockSpec((b, tr, LANE), lambda i: (0, i, 0))],
            out_specs=pl.BlockSpec((1, 1, LANE), lambda i: (i, 0, 0)),
        ),
        compiler_params=pltpu.CompilerParams(
            dimension_semantics=("parallel",),
            vmem_limit_bytes=VMEM_LIMIT),
    )(neg3, stu3)
    return jnp.sum(partials)


# ---------------------------------------------------------------------------
# ContrastiveLoss (operates on precomputed VGG19-style feature pyramids)
# ---------------------------------------------------------------------------
class ContrastiveLoss:
    """Pallas/JAX port of basicsr ContrastiveLoss.L1_forward (incl. loss_weight)."""

    def __init__(self, loss_weight=1.0, t_detach=False, is_one=False):
        self.loss_weight = loss_weight
        self.t_detach = t_detach
        self.is_one = is_one  # unused by the L1 forward path (parity with PyTorch)
        self.weights = VGG_LEVEL_WEIGHTS

    def __call__(self, teacher_feats, student_feats, neg_feats, blur_neg_feats=None):
        loss = jnp.float32(0.0)
        for i in range(len(teacher_feats)):
            t = teacher_feats[i]
            s = student_feats[i]
            ng = jax.lax.stop_gradient(neg_feats[i])          # neg_i.detach()
            if self.t_detach:
                t = jax.lax.stop_gradient(t)
            n_elem = s.size                                    # B*C*H*W
            d_ts = _abs_diff_sum(t, s) / n_elem
            sn_sum = _pairwise_abs_sum(ng, s)
            if blur_neg_feats is not None:
                bn = jax.lax.stop_gradient(blur_neg_feats[i])
                sn_sum = sn_sum + _abs_diff_sum(bn, s)
            d_sn = sn_sum / n_elem
            loss = loss + self.weights[i] * d_ts / (d_sn + 1e-7)
        return self.loss_weight * loss


# ---------------------------------------------------------------------------
# Demo / self-check
# ---------------------------------------------------------------------------
if __name__ == "__main__":
    key = jax.random.PRNGKey(0)

    batch, negnum, patch = 2, 3, 16
    # Small VGG19-like pyramid: 5 levels, channels grow, spatial halves per slice.
    chans = (8, 16, 32, 64, 64)
    spatial = (patch, patch // 2, patch // 4, patch // 8, patch // 16)

    teacher, student, neg = [], [], []
    for c, hw in zip(chans, spatial):
        k1, k2, k3, key = jax.random.split(key, 4)
        teacher.append(jax.random.normal(k1, (batch, c, hw, hw), jnp.float32))
        student.append(jax.random.normal(k2, (batch, c, hw, hw), jnp.float32))
        neg.append(jax.random.normal(k3, (negnum, c, hw, hw), jnp.float32))

    loss_fn = ContrastiveLoss(loss_weight=1.0, t_detach=False)
    out = loss_fn(teacher, student, neg)
    jax.block_until_ready(out)

    # Plain-JAX reference mirroring the PyTorch L1_forward math.
    ref = jnp.float32(0.0)
    for i in range(len(teacher)):
        d_ts = jnp.mean(jnp.abs(teacher[i] - student[i]))
        diff = jnp.abs(neg[i][:, None] - student[i][None])    # (negnum, B, C, H, W)
        d_sn = jnp.mean(diff.sum(axis=0))
        ref = ref + VGG_LEVEL_WEIGHTS[i] * d_ts / (d_sn + 1e-7)
    ref = 1.0 * ref

    assert jnp.allclose(out, ref, rtol=1e-5, atol=1e-5), (out, ref)
    print("KERNEL_OK")
</pallas_src>

<mosaic_0001>
module attributes {stable_mosaic.version = 11 : i64} {
  func.func @_l1_partial_kernel(%arg0: i32, %arg1: memref<32x128xf32, #tpu.memory_space<vmem>>, %arg2: memref<32x128xf32, #tpu.memory_space<vmem>>, %arg3: memref<1x1x128xf32, #tpu.memory_space<vmem>>) attributes {dimension_semantics = [#tpu.dimension_semantics<parallel>], iteration_bounds = array<i64: 1>, scalar_prefetch = 0 : i64, scratch_operands = 0 : i64, tpu.core_type = #tpu.core_type<tc>, window_params = [{transform_indices = @transform_0, window_bounds = array<i64: 32, 128>}, {transform_indices = @transform_1, window_bounds = array<i64: 32, 128>}, {transform_indices = @transform_2, window_bounds = array<i64: 1, 1, 128>}]} {
    %c0_i32 = arith.constant 0 : i32
    %0 = arith.cmpi slt, %arg0, %c0_i32 : i32
    %1 = arith.extui %0 : i1 to i32
    %c0_i32_0 = arith.constant 0 : i32
    %2 = arith.cmpi ne, %1, %c0_i32_0 : i32
    scf.if %2 {
      %c0 = arith.constant 0 : index
      %c0_3 = arith.constant 0 : index
      %6 = vector.load %arg1[%c0, %c0_3] : memref<32x128xf32, #tpu.memory_space<vmem>>, vector<32x128xf32>
      %c0_4 = arith.constant 0 : index
      %c0_5 = arith.constant 0 : index
      %7 = vector.load %arg2[%c0_4, %c0_5] : memref<32x128xf32, #tpu.memory_space<vmem>>, vector<32x128xf32>
      %8 = arith.subf %6, %7 : vector<32x128xf32>
      %9 = math.absf %8 : vector<32x128xf32>
      %cst = arith.constant dense<0.000000e+00> : vector<128xf32>
      %10 = vector.multi_reduction <add>, %9, %cst [0] : vector<32x128xf32> to vector<128xf32>
      %11 = vector.shape_cast %10 : vector<128xf32> to vector<1x128xf32>
      %12 = vector.shape_cast %11 : vector<1x128xf32> to vector<1x1x128xf32>
      %c0_6 = arith.constant 0 : index
      %c0_7 = arith.constant 0 : index
      %c0_8 = arith.constant 0 : index
      %13 = vector.load %arg3[%c0_6, %c0_7, %c0_8] : memref<1x1x128xf32, #tpu.memory_space<vmem>>, vector<1x1x128xf32>
      tpu.vector_store %arg3[%c0_6, %c0_7, %c0_8], %12 {strides = array<i32>} : memref<1x1x128xf32, #tpu.memory_space<vmem>>, vector<1x1x128xf32>,
    } else {
    }
    %c0_i32_1 = arith.constant 0 : i32
    %3 = arith.cmpi eq, %arg0, %c0_i32_1 : i32
    %4 = arith.extui %3 : i1 to i32
    %c0_i32_2 = arith.constant 0 : i32
    %5 = arith.cmpi ne, %4, %c0_i32_2 : i32
    scf.if %5 {
      %c0 = arith.constant 0 : index
      %c0_3 = arith.constant 0 : index
      %6 = vector.load %arg1[%c0, %c0_3] : memref<32x128xf32, #tpu.memory_space<vmem>>, vector<32x128xf32>
      %c0_4 = arith.constant 0 : index
      %c0_5 = arith.constant 0 : index
      %7 = vector.load %arg2[%c0_4, %c0_5] : memref<32x128xf32, #tpu.memory_space<vmem>>, vector<32x128xf32>
      %8 = arith.subf %6, %7 : vector<32x128xf32>
      %9 = math.absf %8 : vector<32x128xf32>
      %10 = tpu.iota {dimensions = array<i32: 0>} : vector<32x128xi32>
      %11 = tpu.iota {dimensions = array<i32: 1>} : vector<32x128xi32>
      %c32_i32 = arith.constant 32 : i32
      %12 = arith.muli %arg0, %c32_i32 : i32
      %13 = vector.broadcast %12 : i32 to vector<32x128xi32>
      %14 = arith.addi %13, %10 : vector<32x128xi32>
      %c128_i32 = arith.constant 128 : i32
      %15 = vector.broadcast %c128_i32 : i32 to vector<32x128xi32>
      %16 = arith.muli %14, %15 : vector<32x128xi32>
      %17 = arith.addi %16, %11 : vector<32x128xi32>
      %c4096_i32 = arith.constant 4096 : i32
      %18 = vector.broadcast %c4096_i32 : i32 to vector<32x128xi32>
      %19 = arith.cmpi slt, %17, %18 : vector<32x128xi32>
      %cst = arith.constant 0.000000e+00 : f32
      %20 = vector.broadcast %cst : f32 to vector<32x128xf32>
      %21 = arith.select %19, %9, %20 : vector<32x128xi1>, vector<32x128xf32>
      %cst_6 = arith.constant dense<0.000000e+00> : vector<128xf32>
      %22 = vector.multi_reduction <add>, %21, %cst_6 [0] : vector<32x128xf32> to vector<128xf32>
      %23 = vector.shape_cast %22 : vector<128xf32> to vector<1x128xf32>
      %24 = vector.shape_cast %23 : vector<1x128xf32> to vector<1x1x128xf32>
      %c0_7 = arith.constant 0 : index
      %c0_8 = arith.constant 0 : index
      %c0_9 = arith.constant 0 : index
      %25 = vector.load %arg3[%c0_7, %c0_8, %c0_9] : memref<1x1x128xf32, #tpu.memory_space<vmem>>, vector<1x1x128xf32>
      tpu.vector_store %arg3[%c0_7, %c0_8, %c0_9], %24 {strides = array<i32>} : memref<1x1x128xf32, #tpu.memory_space<vmem>>, vector<1x1x128xf32>,
    } else {
    }
    return
  }
  func.func @transform_0(%arg0: i32) -> (i32, i32) {
    %c0_i32 = arith.constant 0 : i32
    %c0_i32_0 = arith.constant 0 : i32
    return %arg0, %c0_i32 : i32, i32
  }
  func.func @transform_1(%arg0: i32) -> (i32, i32) {
    %c0_i32 = arith.constant 0 : i32
    %c0_i32_0 = arith.constant 0 : i32
    return %arg0, %c0_i32 : i32, i32
  }
  func.func @transform_2(%arg0: i32) -> (i32, i32, i32) {
    %c0_i32 = arith.constant 0 : i32
    %c0_i32_0 = arith.constant 0 : i32
    %c0_i32_1 = arith.constant 0 : i32
    return %arg0, %c0_i32, %c0_i32_0 : i32, i32, i32
  }
}

</mosaic_0001>

<bundles_post_ra>
// kernel: tpu_custom_call.1
= control target key start
LH: loop header
LB: loop body
LE: loop exit
PB: predicated region body
PF: predicated region fallthrough
CT: control target
= control target key end

     0   :  { %7 = vsyncpa [#allocation3], 0  ;;  %s245_s0 = inlined_call_operand.hbm [shape: f32[32,128], index: 0, kind: input, shape index: {}]   ;;  %s246_s1 = inlined_call_operand.hbm [shape: f32[32,128], index: 1, kind: input, shape index: {}]   ;;  %s247_s2 = inlined_call_operand.hbm [shape: f32[1,1,128], index: 2, kind: output, shape index: {}]  }
   0x1   :  { %8 = vsyncpa [#allocation6], 0 }
   0x2   :  { %9 = vsyncpa [#allocation4], 0  ;;  %s216_s9 = smov [#allocation2]  }
   0x3   :  { %s15_s10 = sshll.u32 %s216_s9, 4  ;;  %s16_s10 = int_to_ptr.vmem [resolvable:$true] %s15_s10 }
   0x4   :  { %s158_s11 = scalar_lea.vmem %s16_s10, 512  ;;  %p163_p1 = scmp.lt.s32.totalorder %s16_s10, %s16_s10 }
   0x5   :  { %p159_p0 = scmp.ne.s32.totalorder %s16_s10, %s158_s11  ;;  %p164_p2 = scmp.lt.s32.totalorder %s158_s11, %s158_s11 }
   0x7   :  { %p165_p3 = por %p164_p2, %p163_p1 }
   0x9   :  { %p166_p4 = pnand %p165_p3, %p159_p0 }
   0xb   :  { %169 = shalt.err (!%p166_p4)
}
   0xc   :  { %s217_s12 = smov 128   ;;  %s218_s13 = smov 8  }
   0xd   :  { %21 = dma.hbm_to_vmem [thread:$0]  %s245_s0, 512, %s16_s10, [#allocation3], %s217_s12, %s217_s12, %s218_s13  }
   0xe   :  { %s219_s16 = smov [#allocation5]  }
   0xf   :  { %s27_s17 = sshll.u32 %s219_s16, 4  ;;  %s28_s17 = int_to_ptr.vmem [resolvable:$true] %s27_s17 }
  0x10   :  { %s178_s18 = scalar_lea.vmem %s28_s17, 512  ;;  %p183_p6 = scmp.lt.s32.totalorder %s28_s17, %s28_s17 }
  0x11   :  { %p179_p5 = scmp.ne.s32.totalorder %s28_s17, %s178_s18  ;;  %p184_p7 = scmp.lt.s32.totalorder %s178_s18, %s178_s18 }
  0x13   :  { %p185_p8 = por %p184_p7, %p183_p6 }
  0x15   :  { %p186_p9 = pnand %p185_p8, %p179_p5 }
  0x17   :  { %189 = shalt.err (!%p186_p9)
}
  0x18   :  { %33 = dma.hbm_to_vmem [thread:$0]  %s246_s1, 512, %s28_s17, [#allocation6], %s217_s12, %s217_s12, %s218_s13  }
  0x19   :  { %210 = dma.done.wait [#allocation3], 512  }
  0x1a   :  { %211 = vsyncadd [#allocation3], 4294966784 }
  0x1b   :  { %212 = dma.done.wait [#allocation6], 512  }
  0x1c   :  { %213 = vsyncadd [#allocation6], 4294966784  ;;  %v90_v0 = vlaneseq  ;;  %v74_v10 = vld [vmem:[#allocation2] sm:$0xff]  ;;  %v75_v11 = vld [vmem:[#allocation2 + $0x8] sm:$0xff]  ;;  %s220_s0 = smov [#allocation7]  }
  0x1d   :  { %v76_v12 = vld [vmem:[#allocation2 + $0x10] sm:$0xff]  ;;  %v77_v14 = vld [vmem:[#allocation2 + $0x18] sm:$0xff]  ;;  %v78_v15 = vld [vmem:[#allocation5] sm:$0xff]  ;;  %s135_s1 = sshll.u32 %s220_s0, 4  ;;  %s136_s1 = int_to_ptr.vmem [resolvable:$true] %s135_s1 }
  0x1e   :  { %v91_v1 = vshrl.u32 %v90_v0, 7  ;;  %v96_v2 = vand.u32 127, %v90_v0  ;;  %v79_v16 = vld [vmem:[#allocation5 + $0x8] sm:$0xff]  ;;  %v80_v19 = vld [vmem:[#allocation5 + $0x10] sm:$0xff]  ;;  %v81_v20 = vld [vmem:[#allocation5 + $0x18] sm:$0xff]  ;;  %v82_v21 = vsub.f32 %v74_v10, %v78_v15  ;;  %s190_s21 = scalar_lea.vmem %s136_s1, 16  ;;  %p195_p11 = scmp.lt.s32.totalorder %s136_s1, %s136_s1 }
  0x1f   :  { %v83_v22 = vsub.f32 %v75_v11, %v79_v16  ;;  %v84_v24 = vsub.f32 %v76_v12, %v80_v19  ;;  %v85_v25 = vsub.f32 %v77_v14, %v81_v20  ;;  %p191_p10 = scmp.ne.s32.totalorder %s136_s1, %s190_s21  ;;  %s194_s22 = scalar_lea.vmem %s136_s1, 32 }
  0x20   :  { %v92_v3 = vadd.s32 8, %v91_v1  ;;  %v93_v4 = vadd.s32 16, %v91_v1  ;;  %v94_v5 = vadd.s32 24, %v91_v1  ;;  %v103_v6 = vmul.u32 128, %v91_v1  ;;  %p196_p12 = scmp.lt.s32.totalorder %s194_s22, %s190_s21 }
  0x21   :  { %v86_v26 = vand.u32 2147483647, %v82_v21  ;;  %v87_v27 = vand.u32 2147483647, %v83_v22  ;;  %v88_v28 = vand.u32 2147483647, %v84_v24 }
  0x22   :  { %v104_v7 = vmul.u32 128, %v92_v3  ;;  %v105_v8 = vmul.u32 128, %v93_v4  ;;  %v107_v9 = vadd.s32 %v103_v6, %v96_v2  ;;  %v89_v29 = vand.u32 2147483647, %v85_v25  ;;  %p197_p13 = por %p196_p12, %p195_p11 }
  0x23   :  { %v106_v13 = vmul.u32 128, %v94_v5 }
  0x24   :  { %v108_v17 = vadd.s32 %v104_v7, %v96_v2  ;;  %v109_v18 = vadd.s32 %v105_v8, %v96_v2  ;;  %vm111_vm0 = vcmp.lt.s32.totalorder %v107_v9, 4096  ;;  %p198_p0 = pnand %p197_p13, %p191_p10 }
  0x25   :  { %v110_v23 = vadd.s32 %v106_v13, %v96_v2  ;;  %v115_v30 = vsel %vm111_vm0, %v86_v26, 0.0 }
  0x26   :  { %vm112_vm1 = vcmp.lt.s32.totalorder %v108_v17, 4096  ;;  %vm113_vm2 = vcmp.lt.s32.totalorder %v109_v18, 4096 }
  0x27   :  { %vm114_vm3 = vcmp.lt.s32.totalorder %v110_v23, 4096  ;;  %v116_v31 = vsel %vm112_vm1, %v87_v27, 0.0  ;;  %v117_v32 = vsel %vm113_vm2, %v88_v28, 0.0 }
  0x28   :  { %v119_v33 = vadd.f32 %v116_v31, %v115_v30  ;;  %v118_v34 = vsel %vm114_vm3, %v89_v29, 0.0 }
  0x2a   :  { %v120_v35 = vadd.f32 %v119_v33, %v117_v32 }
  0x2c   :  { %v121_v36 = vadd.f32 %v120_v35, %v118_v34 }
  0x2e   :  { %v122_v37 = vrot.slane %v121_v36, 4 }
  0x30   :  { %v123_v38 = vadd.f32 %v122_v37, %v121_v36 }
  0x32   :  { %v124_v39 = vrot.slane %v123_v38, 2 }
  0x34   :  { %v125_v40 = vadd.f32 %v124_v39, %v123_v38 }
  0x36   :  { %v126_v41 = vrot.slane %v125_v40, 1 }
  0x38   :  { %v127_v42 = vadd.f32 %v126_v41, %v125_v40 }
  0x3a   :  { %128 = vst [vmem:[#allocation7] sm:$0x1] %v127_v42 }
  0x3b   :  { %201 = shalt.err (!%p198_p0)
}
  0x3c   :  { %138 = dma.vmem_to_hbm [thread:$0]  %s136_s1, 16, %s247_s2, [#allocation4]  }
  0x3d   :  { %214 = dma.done.wait [#allocation4], 16  }
  0x3e   :  { %215 = vsyncadd [#allocation4], 4294967280 }
  0x3f   :  { %142 = vsyncpa [#allocation3], 1 }
  0x40   :  { %143 = vsyncpa [#allocation6], 1 }
  0x41   :  { %144 = vsyncpa [#allocation4], 1 }

</bundles_post_ra>
